<compile_context>
chip_gen: v7x
topology: tpu7x:2x2x1
jax: 0.10.0
libtpu: 0.0.40
codegen_flags: <defaults>
</compile_context>

<pallas_src>
import functools

import jax
import jax.numpy as jnp
from jax import lax
from jax.experimental import pallas as pl
from jax.experimental.pallas import tpu as pltpu


def _ftd_kernel(x_ref, mask_ref, wbr_ref, bbr_ref, wpr_ref, bpr_ref, o_ref, *, W):
    """One batch element per grid step, channels on sublanes, H*W on lanes.

    x_ref   : [1, Cin, H*W]      input image (NCHW with H,W flattened)
    mask_ref: [2, H*W]           row 0: 0.0 where w == 0 ; row 1: 0.0 where w == W-1
    wbr_ref : [2*Cout, 5*Cin]    fused (time; freq) branch weights, BN scale folded in
                                 column blocks: [x(w-1), x(w+1), x(h-1), x(h+1), x]
    bbr_ref : [2*Cout, 1]        folded BN biases for (time; freq)
    wpr_ref : [Cout, 2*Cout]     1x1 projection weights, BN scale folded in
    bpr_ref : [Cout, 1]          folded BN bias for projection
    o_ref   : [1, Cout, H*W]
    """
    x = x_ref[0]                                   # (Cin, HW) f32
    Cin, HW = x.shape

    zero1 = jnp.zeros((Cin, 1), jnp.float32)
    zeroW = jnp.zeros((Cin, W), jnp.float32)

    m_w0 = mask_ref[0:1, :]                        # (1, HW) zero at w == 0
    m_wl = mask_ref[1:2, :]                        # (1, HW) zero at w == W-1

    # SAME-padded shifted copies (zero beyond the image edges).
    xs_m1 = jnp.concatenate([zero1, x[:, :HW - 1]], axis=1) * m_w0   # x[h, w-1]
    xs_p1 = jnp.concatenate([x[:, 1:], zero1], axis=1) * m_wl        # x[h, w+1]
    xs_mW = jnp.concatenate([zeroW, x[:, :HW - W]], axis=1)          # x[h-1, w]
    xs_pW = jnp.concatenate([x[:, W:], zeroW], axis=1)               # x[h+1, w]

    xs_all = jnp.concatenate([xs_m1, xs_p1, xs_mW, xs_pW, x], axis=0)  # (5*Cin, HW)

    # Both conv branches (3 taps each, BN scale pre-folded) in one MXU dot.
    tf = jnp.dot(wbr_ref[...], xs_all, preferred_element_type=jnp.float32)
    tf = jnp.maximum(tf + bbr_ref[...], 0.0)                           # (2*Cout, HW)

    # 1x1 projection over concat([time; freq]) in one MXU dot.
    out = jnp.dot(wpr_ref[...], tf, preferred_element_type=jnp.float32)
    out = jnp.maximum(out + bpr_ref[...], 0.0)                         # (Cout, HW)

    o_ref[0] = out.astype(o_ref.dtype)


@jax.jit
def freq_time_block_pallas(x_nchw, params):
    """Forward pass of Freq_Time_Depthwise_Block (stride=1, eval-mode BN)."""
    wt, wf, wp = params["wt"], params["wf"], params["wp"]   # raw conv weights
    st, bt = params["st"], params["bt"]                     # folded BN (scale, bias)
    sf, bf = params["sf"], params["bf"]
    sp, bp = params["sp"], params["bp"]

    x = x_nchw.astype(jnp.float32)
    N, Cin, H, W = x.shape
    Cout = wt.shape[-1]
    HW = H * W

    # Free reshape: NCHW with contiguous H,W -> [N, Cin, H*W] (no transpose, no pad).
    x2 = x.reshape(N, Cin, HW)

    # --- Wrapper-side weight packing (tiny, constant-folded under jit) -----------
    # Fold BN scales into weights; build the fused branch weight matrix whose
    # column blocks match the concatenation order in the kernel:
    #   [x(w-1), x(w+1), x(h-1), x(h+1), x(center)]
    zc = jnp.zeros((Cout, Cin), jnp.float32)
    wt0, wt1, wt2 = wt[0].T, wt[1].T, wt[2].T          # (Cout, Cin) per tap along W
    wf0, wf1, wf2 = wf[0].T, wf[1].T, wf[2].T          # (Cout, Cin) per tap along H
    w_time = jnp.concatenate([wt0, wt2, zc, zc, wt1], axis=1) * st[:, None]
    w_freq = jnp.concatenate([zc, zc, wf0, wf2, wf1], axis=1) * sf[:, None]
    w_br = jnp.concatenate([w_time, w_freq], axis=0)   # (2*Cout, 5*Cin)
    b_br = jnp.concatenate([bt, bf])[:, None]          # (2*Cout, 1)

    w_pr = wp.T * sp[:, None]                          # (Cout, 2*Cout), BN scale folded
    b_pr = bp[:, None]                                 # (Cout, 1)

    # Row-boundary masks for the +/-1 (time) shifts in the flattened H*W axis.
    w_idx = jnp.arange(HW, dtype=jnp.int32) % W
    mask = jnp.stack([(w_idx != 0), (w_idx != W - 1)]).astype(jnp.float32)  # (2, HW)

    kernel = functools.partial(_ftd_kernel, W=W)

    out = pl.pallas_call(
        kernel,
        out_shape=jax.ShapeDtypeStruct((N, Cout, HW), jnp.float32),
        grid=(N,),
        in_specs=[
            pl.BlockSpec((1, Cin, HW), lambda n: (n, 0, 0)),
            pl.BlockSpec((2, HW), lambda n: (0, 0)),
            pl.BlockSpec((2 * Cout, 5 * Cin), lambda n: (0, 0)),
            pl.BlockSpec((2 * Cout, 1), lambda n: (0, 0)),
            pl.BlockSpec((Cout, 2 * Cout), lambda n: (0, 0)),
            pl.BlockSpec((Cout, 1), lambda n: (0, 0)),
        ],
        out_specs=pl.BlockSpec((1, Cout, HW), lambda n: (n, 0, 0)),
        compiler_params=pltpu.CompilerParams(
            dimension_semantics=("parallel",),
            vmem_limit_bytes=32 * 1024 * 1024,
        ),
    )(x2, mask, w_br, b_br, w_pr, b_pr)

    # Free reshape back to NCHW.
    return out.reshape(N, Cout, H, W)


def freq_time_block_reference(x_nchw, params):
    """Pure-JAX reference (lax.conv), correctness checking only."""
    wt, wf, wp = params["wt"], params["wf"], params["wp"]
    st, bt = params["st"], params["bt"]
    sf, bf = params["sf"], params["bf"]
    sp, bp = params["sp"], params["bp"]

    x = jnp.transpose(x_nchw, (0, 2, 3, 1)).astype(jnp.float32)  # NHWC
    dn = ("NHWC", "HWIO", "NHWC")

    def conv(inp, w_hwio):
        return lax.conv_general_dilated(inp, w_hwio, (1, 1), "SAME",
                                        dimension_numbers=dn)

    t = jnp.maximum(conv(x, wt[jnp.newaxis]) * st + bt, 0.0)        # (1,3,Cin,Cout)
    f = jnp.maximum(conv(x, wf[:, jnp.newaxis]) * sf + bf, 0.0)     # (3,1,Cin,Cout)
    cat = jnp.concatenate([t, f], axis=-1)
    out = jnp.maximum(conv(cat, wp[jnp.newaxis, jnp.newaxis]) * sp + bp, 0.0)
    return jnp.transpose(out, (0, 3, 1, 2))


def make_params(key, cin, cout):
    ks = jax.random.split(key, 16)
    eps = 1e-3

    def bn_fold(kg, kb, km, kv, c):
        gamma = jax.random.uniform(kg, (c,), jnp.float32, 0.5, 1.5)
        beta = jax.random.normal(kb, (c,), jnp.float32) * 0.1
        mean = jax.random.normal(km, (c,), jnp.float32) * 0.1
        var = jax.random.uniform(kv, (c,), jnp.float32, 0.5, 1.5)
        scale = gamma / jnp.sqrt(var + eps)
        bias = beta - mean * scale
        return scale, bias

    wt = jax.random.normal(ks[0], (3, cin, cout), jnp.float32) * 0.2   # time taps (along W)
    wf = jax.random.normal(ks[1], (3, cin, cout), jnp.float32) * 0.2   # freq taps (along H)
    wp = jax.random.normal(ks[2], (2 * cout, cout), jnp.float32) * 0.2  # 1x1 projection

    st, bt = bn_fold(ks[3], ks[4], ks[5], ks[6], cout)
    sf, bf = bn_fold(ks[7], ks[8], ks[9], ks[10], cout)
    sp, bp = bn_fold(ks[11], ks[12], ks[13], ks[14], cout)

    return dict(wt=wt, wf=wf, wp=wp, st=st, bt=bt, sf=sf, bf=bf, sp=sp, bp=bp)


if __name__ == "__main__":
    key = jax.random.PRNGKey(0)
    k_x, k_p = jax.random.split(key)

    N, Cin, H, W = 2, 4, 16, 16
    Cout = 8

    x_nchw = jax.random.normal(k_x, (N, Cin, H, W), jnp.float32)
    params = make_params(k_p, Cin, Cout)

    out = freq_time_block_pallas(x_nchw, params)
    out = jax.block_until_ready(out)

    ref = freq_time_block_reference(x_nchw, params)
    assert out.shape == (N, Cout, H, W)
    assert jnp.allclose(out, ref, atol=1e-4, rtol=1e-4), "mismatch vs reference"

    print("KERNEL_OK")
</pallas_src>

<mosaic_0001>
module attributes {stable_mosaic.version = 11 : i64} {
  func.func @_ftd_kernel(%arg0: i32, %arg1: memref<1x4x256xf32, #tpu.memory_space<vmem>>, %arg2: memref<2x256xf32, #tpu.memory_space<vmem>>, %arg3: memref<16x20xf32, #tpu.memory_space<vmem>>, %arg4: memref<16x1xf32, #tpu.memory_space<vmem>>, %arg5: memref<8x16xf32, #tpu.memory_space<vmem>>, %arg6: memref<8x1xf32, #tpu.memory_space<vmem>>, %arg7: memref<1x8x256xf32, #tpu.memory_space<vmem>>) attributes {dimension_semantics = [#tpu.dimension_semantics<parallel>], iteration_bounds = array<i64: 2>, scalar_prefetch = 0 : i64, scratch_operands = 0 : i64, tpu.core_type = #tpu.core_type<tc>, window_params = [{transform_indices = @transform_0, window_bounds = array<i64: 1, 4, 256>}, {pipeline_mode = #tpu.pipeline_mode<synchronous>, transform_indices = @transform_1, window_bounds = array<i64: 2, 256>}, {pipeline_mode = #tpu.pipeline_mode<synchronous>, transform_indices = @transform_2, window_bounds = array<i64: 16, 20>}, {pipeline_mode = #tpu.pipeline_mode<synchronous>, transform_indices = @transform_3, window_bounds = array<i64: 16, 1>}, {pipeline_mode = #tpu.pipeline_mode<synchronous>, transform_indices = @transform_4, window_bounds = array<i64: 8, 16>}, {pipeline_mode = #tpu.pipeline_mode<synchronous>, transform_indices = @transform_5, window_bounds = array<i64: 8, 1>}, {transform_indices = @transform_6, window_bounds = array<i64: 1, 8, 256>}]} {
    %c0 = arith.constant 0 : index
    %c0_0 = arith.constant 0 : index
    %c0_1 = arith.constant 0 : index
    %0 = vector.load %arg1[%c0, %c0_0, %c0_1] : memref<1x4x256xf32, #tpu.memory_space<vmem>>, vector<1x4x256xf32>
    %1 = vector.shape_cast %0 : vector<1x4x256xf32> to vector<4x256xf32>
    %cst = arith.constant 0.000000e+00 : f32
    %2 = vector.broadcast %cst : f32 to vector<4x1xf32>
    %cst_2 = arith.constant 0.000000e+00 : f32
    %3 = vector.broadcast %cst_2 : f32 to vector<4x16xf32>
    %c0_3 = arith.constant 0 : index
    %c0_4 = arith.constant 0 : index
    %4 = vector.load %arg2[%c0_3, %c0_4] : memref<2x256xf32, #tpu.memory_space<vmem>>, vector<1x256xf32>
    %c1 = arith.constant 1 : index
    %c0_5 = arith.constant 0 : index
    %5 = vector.load %arg2[%c1, %c0_5] : memref<2x256xf32, #tpu.memory_space<vmem>>, vector<1x256xf32>
    %6 = vector.extract_strided_slice %1 {offsets = [0, 0], sizes = [4, 255], strides = [1, 1]} : vector<4x256xf32> to vector<4x255xf32>
    %7 = tpu.concatenate %2, %6 in 1 : vector<4x1xf32>, vector<4x255xf32> -> vector<4x256xf32>
    %8 = vector.broadcast %4 : vector<1x256xf32> to vector<4x256xf32>
    %9 = arith.mulf %7, %8 : vector<4x256xf32>
    %10 = vector.extract_strided_slice %1 {offsets = [0, 1], sizes = [4, 255], strides = [1, 1]} : vector<4x256xf32> to vector<4x255xf32>
    %11 = tpu.concatenate %10, %2 in 1 : vector<4x255xf32>, vector<4x1xf32> -> vector<4x256xf32>
    %12 = vector.broadcast %5 : vector<1x256xf32> to vector<4x256xf32>
    %13 = arith.mulf %11, %12 : vector<4x256xf32>
    %14 = vector.extract_strided_slice %1 {offsets = [0, 0], sizes = [4, 240], strides = [1, 1]} : vector<4x256xf32> to vector<4x240xf32>
    %15 = tpu.concatenate %3, %14 in 1 : vector<4x16xf32>, vector<4x240xf32> -> vector<4x256xf32>
    %16 = vector.extract_strided_slice %1 {offsets = [0, 16], sizes = [4, 240], strides = [1, 1]} : vector<4x256xf32> to vector<4x240xf32>
    %17 = tpu.concatenate %16, %3 in 1 : vector<4x240xf32>, vector<4x16xf32> -> vector<4x256xf32>
    %18 = tpu.concatenate %9, %13, %15, %17, %1 in 0 : vector<4x256xf32>, vector<4x256xf32>, vector<4x256xf32>, vector<4x256xf32>, vector<4x256xf32> -> vector<20x256xf32>
    %c0_6 = arith.constant 0 : index
    %c0_7 = arith.constant 0 : index
    %19 = vector.load %arg3[%c0_6, %c0_7] : memref<16x20xf32, #tpu.memory_space<vmem>>, vector<16x20xf32>
    %cst_8 = arith.constant dense<0.000000e+00> : vector<16x256xf32>
    %20 = tpu.matmul %19, %18, %cst_8 {dimension_numbers = #tpu.dot_dimension_numbers<[1], [0], [0], [1], [0, 0, 1, 1], [], []>} : vector<16x20xf32>, vector<20x256xf32>, vector<16x256xf32> -> vector<16x256xf32>
    %c0_9 = arith.constant 0 : index
    %c0_10 = arith.constant 0 : index
    %21 = vector.load %arg4[%c0_9, %c0_10] : memref<16x1xf32, #tpu.memory_space<vmem>>, vector<16x1xf32>
    %22 = vector.broadcast %21 : vector<16x1xf32> to vector<16x256xf32>
    %23 = arith.addf %20, %22 : vector<16x256xf32>
    %cst_11 = arith.constant 0.000000e+00 : f32
    %24 = vector.broadcast %cst_11 : f32 to vector<16x256xf32>
    %25 = arith.maximumf %23, %24 : vector<16x256xf32>
    %c0_12 = arith.constant 0 : index
    %c0_13 = arith.constant 0 : index
    %26 = vector.load %arg5[%c0_12, %c0_13] : memref<8x16xf32, #tpu.memory_space<vmem>>, vector<8x16xf32>
    %cst_14 = arith.constant dense<0.000000e+00> : vector<8x256xf32>
    %27 = tpu.matmul %26, %25, %cst_14 {dimension_numbers = #tpu.dot_dimension_numbers<[1], [0], [0], [1], [0, 0, 1, 1], [], []>} : vector<8x16xf32>, vector<16x256xf32>, vector<8x256xf32> -> vector<8x256xf32>
    %c0_15 = arith.constant 0 : index
    %c0_16 = arith.constant 0 : index
    %28 = vector.load %arg6[%c0_15, %c0_16] : memref<8x1xf32, #tpu.memory_space<vmem>>, vector<8x1xf32>
    %29 = vector.broadcast %28 : vector<8x1xf32> to vector<8x256xf32>
    %30 = arith.addf %27, %29 : vector<8x256xf32>
    %cst_17 = arith.constant 0.000000e+00 : f32
    %31 = vector.broadcast %cst_17 : f32 to vector<8x256xf32>
    %32 = arith.maximumf %30, %31 : vector<8x256xf32>
    %c0_18 = arith.constant 0 : index
    %c0_19 = arith.constant 0 : index
    %c0_20 = arith.constant 0 : index
    %33 = vector.load %arg7[%c0_18, %c0_19, %c0_20] : memref<1x8x256xf32, #tpu.memory_space<vmem>>, vector<1x8x256xf32>
    %34 = vector.shape_cast %33 : vector<1x8x256xf32> to vector<8x256xf32>
    %35 = vector.shape_cast %32 : vector<8x256xf32> to vector<1x8x256xf32>
    tpu.vector_store %arg7[%c0_18, %c0_19, %c0_20], %35 {strides = array<i32>} : memref<1x8x256xf32, #tpu.memory_space<vmem>>, vector<1x8x256xf32>,
    return
  }
  func.func @transform_0(%arg0: i32) -> (i32, i32, i32) {
    %c0_i32 = arith.constant 0 : i32
    %c0_i32_0 = arith.constant 0 : i32
    %c0_i32_1 = arith.constant 0 : i32
    return %arg0, %c0_i32, %c0_i32_0 : i32, i32, i32
  }
  func.func @transform_1(%arg0: i32) -> (i32, i32) {
    %c0_i32 = arith.constant 0 : i32
    %c0_i32_0 = arith.constant 0 : i32
    %c0_i32_1 = arith.constant 0 : i32
    return %c0_i32, %c0_i32_0 : i32, i32
  }
  func.func @transform_2(%arg0: i32) -> (i32, i32) {
    %c0_i32 = arith.constant 0 : i32
    %c0_i32_0 = arith.constant 0 : i32
    %c0_i32_1 = arith.constant 0 : i32
    return %c0_i32, %c0_i32_0 : i32, i32
  }
  func.func @transform_3(%arg0: i32) -> (i32, i32) {
    %c0_i32 = arith.constant 0 : i32
    %c0_i32_0 = arith.constant 0 : i32
    %c0_i32_1 = arith.constant 0 : i32
    return %c0_i32, %c0_i32_0 : i32, i32
  }
  func.func @transform_4(%arg0: i32) -> (i32, i32) {
    %c0_i32 = arith.constant 0 : i32
    %c0_i32_0 = arith.constant 0 : i32
    %c0_i32_1 = arith.constant 0 : i32
    return %c0_i32, %c0_i32_0 : i32, i32
  }
  func.func @transform_5(%arg0: i32) -> (i32, i32) {
    %c0_i32 = arith.constant 0 : i32
    %c0_i32_0 = arith.constant 0 : i32
    %c0_i32_1 = arith.constant 0 : i32
    return %c0_i32, %c0_i32_0 : i32, i32
  }
  func.func @transform_6(%arg0: i32) -> (i32, i32, i32) {
    %c0_i32 = arith.constant 0 : i32
    %c0_i32_0 = arith.constant 0 : i32
    %c0_i32_1 = arith.constant 0 : i32
    return %arg0, %c0_i32, %c0_i32_0 : i32, i32, i32
  }
}

</mosaic_0001>

<bundles_post_ra>
// kernel: freq_time_block_pallas.1
= control target key start
LH: loop header
LB: loop body
LE: loop exit
PB: predicated region body
PF: predicated region fallthrough
CT: control target
= control target key end

     0   :  { %s684_s21 = smov 0   ;;  %s759_s0 = inlined_call_operand.vmem [shape: f32[2,4,256], index: 0, kind: input, shape index: {}]   ;;  %s760_s1 = inlined_call_operand.vmem [shape: f32[2,256], index: 1, kind: input, shape index: {}]   ;;  %s761_s2 = inlined_call_operand.vmem [shape: f32[16,20], index: 2, kind: input, shape index: {}]   ;;  %s762_s3 = inlined_call_operand.vmem [shape: f32[16,1], index: 3, kind: input, shape index: {}]   ;;  %s763_s4 = inlined_call_operand.vmem [shape: f32[8,16], index: 4, kind: input, shape index: {}]   ;;  %s764_s5 = inlined_call_operand.vmem [shape: f32[8,1], index: 5, kind: input, shape index: {}]   ;;  %s765_s6 = inlined_call_operand.vmem [shape: f32[2,8,256], index: 6, kind: output, shape index: {}]  }
   0x1 LB: > { %s581_s22 = sadd.s32 4294967295, %s641_s21   ;;  %p585_p0 = scmp.ge.s32.totalorder %s641_s21, 1  ;;  %s641_s21 = sphi %s684_s21, %s16_s21  }
   0x2   : > { %p212_p1 = scmp.lt.s32.totalorder %s641_s21, 3 }
   0x4   : > { %p213_p2 = pnand %p585_p0, %p212_p1 }
   0x5   : > { %p242_p3 = scmp.lt.s32.totalorder (!%p213_p2), %s581_s22, 1  ;;  %s643_s27 = smov (!%p213_p2), 1   ;;  %v647_v4 = vmov (!%p213_p2), 0.0   ;;  %v337_v5 = vld [vmem:[%s762_s3] sm:$0xff] (!%p213_p2)  ;;  %v338_v6 = vld [vmem:[%s762_s3 + $0x8] sm:$0xff] (!%p213_p2)  ;;  %v648_v7 = vmov (!%p213_p2), 0   ;;  %v268_v9 = vlaneseq (!%p213_p2) }
   0x6   : > { %216 = sbr.rel (%p213_p2) target bundleno = 599 (0x257), region = 44  ;;  %s644_s28 = smov (!%p213_p2), 127   ;;  %424 = vmatprep.mubr.f32.mxu0 (!%p213_p2), %v647_v4  ;;  %515 = vmatprep.mubr.f32.mxu1 (!%p213_p2), %v647_v4  ;;  %v442_v8 = vld [vmem:[%s764_s5] sm:$0xff] (!%p213_p2)  ;;  %vm284_vm0 = vcmask (!%p213_p2), 1039360   ;;  %vm262_vm1 = vcmask (!%p213_p2), 7168   ;;  %vm315_vm2 = vcmask (!%p213_p2), 916480  }
   0x7   : > { %s645_s29 = smov (!%p213_p2), 112   ;;  %s646_s30 = smov (!%p213_p2), 16   ;;  %632 = vset.pattern.permute.xlu0 (!%p213_p2), %v648_v7  ;;  %633 = vset.pattern.permute.xlu1 (!%p213_p2), %v648_v7  ;;  %v269_v10 = vshrl.u32 (!%p213_p2), %v268_v9, 7  ;;  %v590_v12 = vld [vmem:[%s760_s1 + $0x1] ss:$2 sm:$0x3] (!%p213_p2) }
   0x8   : > { %v253_v20 = vld [vmem:[%s760_s1] ss:$2 sm:$0x3] (!%p213_p2)  ;;  %vm306_vm3 = vcmask (!%p213_p2), 130048   ;;  %vm330_vm4 = vcmask (!%p213_p2), 1043456   ;;  %vm349_vm5 = vcmask (!%p213_p2), 162816  }
   0x9   : > { %v274_v11 = vsub.s32 (!%p213_p2), 1, %v269_v10  ;;  %v270_v13 = vsub.s32 (!%p213_p2), 0, %v269_v10  ;;  %v335_v51 = vld [vmem:[%s761_s2] sm:$0xff] (!%p213_p2)  ;;  %v336_v52 = vld [vmem:[%s761_s2 + $0x8] sm:$0xff] (!%p213_p2) }
   0xb   : > { %v293_v16 = vrot.slane (!%p213_p2), %v590_v12, %v270_v13  ;;  %v297_v17 = vrot.slane (!%p213_p2), %v590_v12, %v274_v11  ;;  %v271_v25 = vrot.slane (!%p213_p2), %v253_v20, %v270_v13  ;;  %v275_v27 = vrot.slane (!%p213_p2), %v253_v20, %v274_v11 }
   0xd   : > { %s767_s22 = smov (!%p242_p3, %s581_s22), 1 }
   0xe   : > { %s598_s23 = sshll.u32 %s767_s22, 3  ;;  %s599_s25 = sshll.u32 %s767_s22, 4 }
   0xf   : > { %s246_s26 = scalar_lea.vmem %s759_s0, %s598_s23 }
  0x10   : > { %v698_v0 = vld [vmem:[%s246_s26] sm:$0xff] }
  0x11   : > { %258 = vrot.lane.b32.xlu1 %v698_v0, %s643_s27  ;;  %280 = vrot.lane.b32.xlu0 %v698_v0, %s644_s28  ;;  %v704_v1 = vcombine.high %v698_v0, %v698_v0 }
  0x13   : > { %v622_v2 = vpack.i.bf16 %v698_v0, %v704_v1  ;;  %v627_v3 = vpack.i.bf16 %v704_v1, %v698_v0 }
  0x15   : > { %260 = vrot.lane.b32.xlu1 %v704_v1, %s643_s27  ;;  %282 = vrot.lane.b32.xlu0 %v704_v1, %s644_s28  ;;  %s251_s28 = scalar_lea.vmem %s765_s6, %s599_s25 }
  0x19   : > { %623 = vrot.lane.b32.xlu0 %v622_v2, %s645_s29  ;;  %628 = vrot.lane.b32.xlu1 %v627_v3, %s646_s30 }
  0x1d   : > { %341 = vperm.xlu0 %632, %v337_v5   ;;  %346 = vperm.xlu1 %633, %v338_v6   ;;  %v441_v5 = vld [vmem:[%s763_s4] sm:$0xff] }
  0x21   : > { %445 = vperm.xlu1 %633, %v442_v8  }
  0x83   : > { %v259_v14 = vpop.permute.xlu1 %258  ;;  %v281_v15 = vpop.permute.xlu0 %280 }
  0x84   : > { %v266_v26 = vsel %vm262_vm1, 0.0, %v259_v14 }
  0x85   : > { %v278_v41 = vmul.f32 %v271_v25, %v266_v26 }
  0x87   : > { %v261_v18 = vpop.permute.xlu1 %260  ;;  %v283_v19 = vpop.permute.xlu0 %282 }
  0x88   : > { %v285_v21 = vsel %vm284_vm0, %v281_v15, %v283_v19  ;;  %v288_v22 = vsel %vm284_vm0, %v283_v19, 0.0  ;;  %v263_v28 = vsel %vm262_vm1, %v259_v14, %v261_v18 }
  0x89   : > { %v300_v23 = vmul.f32 %v293_v16, %v285_v21  ;;  %v301_v24 = vmul.f32 %v297_v17, %v288_v22  ;;  %v279_v42 = vmul.f32 %v275_v27, %v263_v28 }
  0x8b   : > { %v624_v29 = vpop.permute.xlu0 %623  ;;  %v629_v30 = vpop.permute.xlu1 %628  ;;  %v321_v35 = vrot.slane %v300_v23, 4  ;;  %v322_v36 = vrot.slane %v301_v24, 4 }
  0x8c   : > { %v626_v31 = vunpack.i.h.bf16 %v624_v29  ;;  %v625_v32 = vunpack.i.l.bf16 %v624_v29  ;;  %v631_v33 = vunpack.i.h.bf16 %v629_v30  ;;  %v630_v34 = vunpack.i.l.bf16 %v629_v30 }
  0x8d   : > { %v332_v45 = vsel %vm330_vm4, %v279_v42, %v322_v36  ;;  %v331_v47 = vsel %vm330_vm4, %v278_v41, %v321_v35 }
  0x8e   : > { %v316_v37 = vsel %vm315_vm2, %v626_v31, %v625_v32  ;;  %v318_v38 = vsel %vm315_vm2, %v625_v32, 0.0  ;;  %v310_v39 = vsel %vm306_vm3, 0.0, %v630_v34  ;;  %v307_v40 = vsel %vm306_vm3, %v630_v34, %v631_v33 }
  0x8f   : > { %v326_v43 = vrot.slane %v316_v37, 4  ;;  %v327_v44 = vrot.slane %v318_v38, 4 }
  0x91   : > { %v334_v46 = vsel %vm330_vm4, %v307_v40, %v327_v44  ;;  %v333_v48 = vsel %vm330_vm4, %v310_v39, %v326_v43 }
  0x92   : > { %v600_v49 = vpack.c.bf16 %v334_v46, %v332_v45  ;;  %v602_v50 = vpack.c.bf16 %v333_v48, %v331_v47 }
  0x94   : > { %601 = vmatprep.subr.bf16.mxu0 %v600_v49 }
  0x95   : > { %603 = vmatpush1.bf16.msra.mxu0 %v602_v50 }
  0x96   : > { %591 = vmatprep.subr.msk.mxu0 %vm330_vm4, %v704_v1 }
  0x99   : > { %592 = vmatpush1.msk.msra.mxu0 %vm330_vm4, %v698_v0 }
  0x9a   : > { %593 = vmatmul.mubr.msk.f32.vlgmr.msra.gmra.mrb[0].mxu0 %vm349_vm5, %v335_v51 }
  0x9b   : > { %430 = vmatprep.mubr.f32.mxu0 %v647_v4 }
  0x9c   : > { %v342_v53 = vpop.permute.xlu0 %341  ;;  %v347_v57 = vpop.permute.xlu1 %346 }
  0x9e   : > { %594 = vmatmul.mubr.msk.f32.gmra.mrb[2].mxu0 %vm349_vm5, %v336_v52 }
  0xa0   : > { %v446_v6 = vpop.permute.xlu1 %445 }
 0x16d   : > { %v426_v54 = vpop.f32.mrb[0].mxu0 }
 0x16e   : > { %v428_v55 = vpop.f32.mrb[1].mxu0  ;;  %v427_v56 = vadd.f32 %v426_v54, %v342_v53 }
 0x16f   : > { %v429_v58 = vadd.f32 %v428_v55, %v342_v53 }
 0x170   : > { %v437_v63 = vmax.f32 %v427_v56, 0.0 }
 0x171   : > { %v432_v59 = vpop.f32.mrb[2].mxu0  ;;  %v438_v1 = vmax.f32 %v429_v58, 0.0 }
 0x172   : > { %v433_v60 = vadd.f32 %v432_v59, %v347_v57  ;;  %v434_v61 = vpop.f32.mrb[3].mxu0 }
 0x173   : > { %v435_v62 = vadd.f32 %v434_v61, %v347_v57 }
 0x174   : > { %v439_v0 = vmax.f32 %v433_v60, 0.0 }
 0x175   : > { %v440_v2 = vmax.f32 %v435_v62, 0.0 }
 0x176   : > { %v606_v3 = vpack.c.bf16 %v439_v0, %v437_v63 }
 0x177   : > { %v604_v4 = vpack.c.bf16 %v440_v2, %v438_v1 }
 0x179   : > { %605 = vmatprep.subr.bf16.mxu1 %v604_v4 }
 0x17a   : > { %607 = vmatpush1.bf16.msra.mxu1 %v606_v3 }
 0x17d   : > { %595 = vmatmul.mubr.msk.f32.vlgmr.msra.gmra.mrb[0].mxu1 %vm306_vm3, %v441_v5 }
 0x250   : > { %v517_v7 = vpop.f32.mrb[0].mxu1 }
 0x251   : > { %v518_v8 = vadd.f32 %v517_v7, %v446_v6  ;;  %v519_v9 = vpop.f32.mrb[1].mxu1 }
 0x252   : > { %v520_v10 = vadd.f32 %v519_v9, %v446_v6 }
 0x253   : > { %v522_v11 = vmax.f32 %v518_v8, 0.0 }
 0x254   : > { %v523_v12 = vmax.f32 %v520_v10, 0.0 }
 0x255   : > { %524 = vst [vmem:[%s251_s28] sm:$0xff] %v522_v11 }
 0x256   : > { %525 = vst [vmem:[%s251_s28 + $0x8] sm:$0xff] %v523_v12 }
 0x257 PF: > { %s16_s21 = sadd.s32 1, %s641_s21  }
 0x258   : > { %p13_p4 = scmp.ge.s32.totalorder %s16_s21, 4  }
 0x25a   :  { %15 = sbr.rel (!%p13_p4) target bundleno = 1 (0x1), region = 75 }

</bundles_post_ra>
